<compile_context>
chip_gen: v7x
topology: tpu7x:2x2x1
jax: 0.10.0
libtpu: 0.0.40
codegen_flags: <defaults>
</compile_context>

<pallas_src>
import functools

import jax
import jax.numpy as jnp
from jax.experimental import pallas as pl
from jax.experimental.pallas import tpu as pltpu


def _round_up(n, m):
    return (n + m - 1) // m * m


def _dqn_kernel(x_ref, w1_ref, b1_ref, w2_ref, b2_ref, w3_ref, b3_ref, o_ref):
    cdt = w1_ref.dtype  # MXU operand dtype (bf16 by default)

    # fc1 + relu   (x cast to bf16 in-kernel; weights already [in, out])
    x = x_ref[...].astype(cdt)                                        # [TB, In]
    h1 = jnp.dot(x, w1_ref[...], preferred_element_type=jnp.float32)
    h1 = jnp.maximum(h1 + b1_ref[...], 0.0)                           # [TB, H] f32

    # fc2 + relu
    h2 = jnp.dot(h1.astype(cdt), w2_ref[...], preferred_element_type=jnp.float32)
    h2 = jnp.maximum(h2 + b2_ref[...], 0.0)                           # [TB, H] f32

    # fc3 (no activation)
    h3 = jnp.dot(h2.astype(cdt), w3_ref[...], preferred_element_type=jnp.float32)
    o_ref[...] = (h3 + b3_ref[...]).astype(o_ref.dtype)               # [TB, Out]


def pack_dqn_params(params, compute_dtype=jnp.bfloat16):
    """One-time packing of PyTorch-layout params.

    Weights [out,in] -> [in,out] in compute_dtype (MXU operand layout, no pad),
    biases -> [1,out] f32. Do this ONCE and reuse the packed pytree per call.
    """
    def w(a):
        return jnp.asarray(a).T.astype(compute_dtype)

    def b(a):
        return jnp.asarray(a).astype(jnp.float32).reshape(1, -1)

    return {
        "w1": w(params["w1"]), "b1": b(params["b1"]),
        "w2": w(params["w2"]), "b2": b(params["b2"]),
        "w3": w(params["w3"]), "b3": b(params["b3"]),
    }


def _pick_tb(batch):
    if batch <= 32:
        # Tiny-batch DQN act() path: don't pad to 128 rows.
        return max(16, _round_up(batch, 16))
    # Larger batches: big tiles, but keep >= 2 grid steps so v7x's two
    # TensorCores both get work on the "parallel" batch axis.
    return min(2048, _round_up(-(-batch // 2), 16))


@functools.partial(jax.jit, static_argnames=("block_b",))
def dqn_forward(x, packed, *, block_b=None):
    """x: [B, input_size] f32. packed: output of pack_dqn_params()."""
    B, in_size = x.shape
    hid = packed["w1"].shape[1]
    out_size = packed["w3"].shape[1]

    tb = _round_up(block_b, 16) if block_b is not None else _pick_tb(B)
    b_p = _round_up(B, tb)
    xp = x if b_p == B else jnp.pad(x, ((0, b_p - B), (0, 0)))

    def resident(shape):
        # Same block index every grid step -> stays VMEM-resident, no re-DMA.
        return pl.BlockSpec(shape, lambda i: (0, 0))

    out = pl.pallas_call(
        _dqn_kernel,
        out_shape=jax.ShapeDtypeStruct((b_p, out_size), x.dtype),
        grid_spec=pl.GridSpec(
            grid=(b_p // tb,),
            in_specs=[
                pl.BlockSpec((tb, in_size), lambda i: (i, 0)),   # x tile (streamed, unpadded)
                resident((in_size, hid)), resident((1, hid)),    # fc1
                resident((hid, hid)), resident((1, hid)),        # fc2
                resident((hid, out_size)), resident((1, out_size)),  # fc3
            ],
            out_specs=pl.BlockSpec((tb, out_size), lambda i: (i, 0)),
        ),
        compiler_params=pltpu.CompilerParams(
            dimension_semantics=("parallel",),  # v7x: shard batch tiles over both TCs
        ),
    )(xp, packed["w1"], packed["b1"], packed["w2"], packed["b2"],
      packed["w3"], packed["b3"])

    return out if b_p == B else out[:B]


def init_dqn_params(key, input_size, output_size, hidden=128, dtype=jnp.float32):
    """Deterministic PyTorch-Linear-style init: U(-1/sqrt(fan_in), 1/sqrt(fan_in))."""
    ks = jax.random.split(key, 6)

    def linear(kw, kb, fan_in, fan_out):
        bound = 1.0 / jnp.sqrt(fan_in)
        w = jax.random.uniform(kw, (fan_out, fan_in), dtype, -bound, bound)
        b = jax.random.uniform(kb, (fan_out,), dtype, -bound, bound)
        return w, b

    w1, b1 = linear(ks[0], ks[1], input_size, hidden)
    w2, b2 = linear(ks[2], ks[3], hidden, hidden)
    w3, b3 = linear(ks[4], ks[5], hidden, output_size)
    return {"w1": w1, "b1": b1, "w2": w2, "b2": b2, "w3": w3, "b3": b3}


def dqn_reference(x, p):
    """Full-f32 reference (matches the PyTorch module exactly)."""
    h1 = jnp.maximum(x @ p["w1"].T + p["b1"], 0.0)
    h2 = jnp.maximum(h1 @ p["w2"].T + p["b2"], 0.0)
    return h2 @ p["w3"].T + p["b3"]


def dqn_reference_quantized(x, p, cdt):
    """Reference mirroring the kernel's bf16-operand / f32-accumulate math."""
    def lin(h, w, b):
        return jnp.dot(h.astype(cdt), w.T.astype(cdt),
                       preferred_element_type=jnp.float32) + b.astype(jnp.float32)
    h1 = jnp.maximum(lin(x, p["w1"], p["b1"]), 0.0)
    h2 = jnp.maximum(lin(h1, p["w2"], p["b2"]), 0.0)
    return lin(h2, p["w3"], p["b3"])


if __name__ == "__main__":
    key = jax.random.PRNGKey(0)
    k_params, k_x = jax.random.split(key)

    batch = 2
    input_size = 16   # small state vector
    output_size = 8   # number of discrete actions

    params = init_dqn_params(k_params, input_size, output_size)
    packed = pack_dqn_params(params)            # one-time weight packing
    x = jax.random.normal(k_x, (batch, input_size), jnp.float32)

    out = jax.block_until_ready(dqn_forward(x, packed))
    assert out.shape == (batch, output_size)

    # Kernel exactness vs a reference with identical bf16 operand quantization.
    ref_q = dqn_reference_quantized(x, params, jnp.bfloat16)
    assert jnp.allclose(out, ref_q, atol=2e-3, rtol=2e-3), "mismatch vs bf16-mirrored ref"

    # Module semantics vs the full-f32 PyTorch-equivalent reference (bf16 tolerance).
    ref = dqn_reference(x, params)
    assert jnp.allclose(out, ref, atol=5e-2, rtol=5e-2), "mismatch vs f32 reference"

    print("KERNEL_OK")
</pallas_src>

<mosaic_0001>
module attributes {stable_mosaic.version = 11 : i64} {
  func.func @_dqn_kernel(%arg0: i32, %arg1: memref<16x16xf32, #tpu.memory_space<vmem>>, %arg2: memref<16x128xbf16, #tpu.memory_space<vmem>>, %arg3: memref<1x128xf32, #tpu.memory_space<vmem>>, %arg4: memref<128x128xbf16, #tpu.memory_space<vmem>>, %arg5: memref<1x128xf32, #tpu.memory_space<vmem>>, %arg6: memref<128x8xbf16, #tpu.memory_space<vmem>>, %arg7: memref<1x8xf32, #tpu.memory_space<vmem>>, %arg8: memref<16x8xf32, #tpu.memory_space<vmem>>) attributes {dimension_semantics = [#tpu.dimension_semantics<parallel>], iteration_bounds = array<i64: 1>, scalar_prefetch = 0 : i64, scratch_operands = 0 : i64, tpu.core_type = #tpu.core_type<tc>, window_params = [{transform_indices = @transform_0, window_bounds = array<i64: 16, 16>}, {pipeline_mode = #tpu.pipeline_mode<synchronous>, transform_indices = @transform_1, window_bounds = array<i64: 16, 128>}, {pipeline_mode = #tpu.pipeline_mode<synchronous>, transform_indices = @transform_2, window_bounds = array<i64: 1, 128>}, {pipeline_mode = #tpu.pipeline_mode<synchronous>, transform_indices = @transform_3, window_bounds = array<i64: 128, 128>}, {pipeline_mode = #tpu.pipeline_mode<synchronous>, transform_indices = @transform_4, window_bounds = array<i64: 1, 128>}, {pipeline_mode = #tpu.pipeline_mode<synchronous>, transform_indices = @transform_5, window_bounds = array<i64: 128, 8>}, {pipeline_mode = #tpu.pipeline_mode<synchronous>, transform_indices = @transform_6, window_bounds = array<i64: 1, 8>}, {transform_indices = @transform_7, window_bounds = array<i64: 16, 8>}]} {
    %c0 = arith.constant 0 : index
    %c0_0 = arith.constant 0 : index
    %0 = vector.load %arg1[%c0, %c0_0] : memref<16x16xf32, #tpu.memory_space<vmem>>, vector<16x16xf32>
    %1 = arith.truncf %0 : vector<16x16xf32> to vector<16x16xbf16>
    %c0_1 = arith.constant 0 : index
    %c0_2 = arith.constant 0 : index
    %2 = vector.load %arg2[%c0_1, %c0_2] : memref<16x128xbf16, #tpu.memory_space<vmem>>, vector<16x128xbf16>
    %cst = arith.constant dense<0.000000e+00> : vector<16x128xf32>
    %3 = tpu.matmul %1, %2, %cst {dimension_numbers = #tpu.dot_dimension_numbers<[1], [0], [0], [1], [0, 0, 1, 1], [], []>} : vector<16x16xbf16>, vector<16x128xbf16>, vector<16x128xf32> -> vector<16x128xf32>
    %c0_3 = arith.constant 0 : index
    %c0_4 = arith.constant 0 : index
    %4 = vector.load %arg3[%c0_3, %c0_4] : memref<1x128xf32, #tpu.memory_space<vmem>>, vector<1x128xf32>
    %5 = vector.broadcast %4 : vector<1x128xf32> to vector<16x128xf32>
    %6 = arith.addf %3, %5 : vector<16x128xf32>
    %cst_5 = arith.constant 0.000000e+00 : f32
    %7 = vector.broadcast %cst_5 : f32 to vector<16x128xf32>
    %8 = arith.maximumf %6, %7 : vector<16x128xf32>
    %9 = arith.truncf %8 : vector<16x128xf32> to vector<16x128xbf16>
    %c0_6 = arith.constant 0 : index
    %c0_7 = arith.constant 0 : index
    %10 = vector.load %arg4[%c0_6, %c0_7] : memref<128x128xbf16, #tpu.memory_space<vmem>>, vector<128x128xbf16>
    %cst_8 = arith.constant dense<0.000000e+00> : vector<16x128xf32>
    %11 = tpu.matmul %9, %10, %cst_8 {dimension_numbers = #tpu.dot_dimension_numbers<[1], [0], [0], [1], [0, 0, 1, 1], [], []>} : vector<16x128xbf16>, vector<128x128xbf16>, vector<16x128xf32> -> vector<16x128xf32>
    %c0_9 = arith.constant 0 : index
    %c0_10 = arith.constant 0 : index
    %12 = vector.load %arg5[%c0_9, %c0_10] : memref<1x128xf32, #tpu.memory_space<vmem>>, vector<1x128xf32>
    %13 = vector.broadcast %12 : vector<1x128xf32> to vector<16x128xf32>
    %14 = arith.addf %11, %13 : vector<16x128xf32>
    %cst_11 = arith.constant 0.000000e+00 : f32
    %15 = vector.broadcast %cst_11 : f32 to vector<16x128xf32>
    %16 = arith.maximumf %14, %15 : vector<16x128xf32>
    %17 = arith.truncf %16 : vector<16x128xf32> to vector<16x128xbf16>
    %c0_12 = arith.constant 0 : index
    %c0_13 = arith.constant 0 : index
    %18 = vector.load %arg6[%c0_12, %c0_13] : memref<128x8xbf16, #tpu.memory_space<vmem>>, vector<128x8xbf16>
    %cst_14 = arith.constant dense<0.000000e+00> : vector<16x8xf32>
    %19 = tpu.matmul %17, %18, %cst_14 {dimension_numbers = #tpu.dot_dimension_numbers<[1], [0], [0], [1], [0, 0, 1, 1], [], []>} : vector<16x128xbf16>, vector<128x8xbf16>, vector<16x8xf32> -> vector<16x8xf32>
    %c0_15 = arith.constant 0 : index
    %c0_16 = arith.constant 0 : index
    %20 = vector.load %arg7[%c0_15, %c0_16] : memref<1x8xf32, #tpu.memory_space<vmem>>, vector<1x8xf32>
    %21 = vector.broadcast %20 : vector<1x8xf32> to vector<16x8xf32>
    %22 = arith.addf %19, %21 : vector<16x8xf32>
    %c0_17 = arith.constant 0 : index
    %c0_18 = arith.constant 0 : index
    %23 = vector.load %arg8[%c0_17, %c0_18] : memref<16x8xf32, #tpu.memory_space<vmem>>, vector<16x8xf32>
    tpu.vector_store %arg8[%c0_17, %c0_18], %22 {strides = array<i32>} : memref<16x8xf32, #tpu.memory_space<vmem>>, vector<16x8xf32>,
    return
  }
  func.func @transform_0(%arg0: i32) -> (i32, i32) {
    %c0_i32 = arith.constant 0 : i32
    %c0_i32_0 = arith.constant 0 : i32
    return %arg0, %c0_i32 : i32, i32
  }
  func.func @transform_1(%arg0: i32) -> (i32, i32) {
    %c0_i32 = arith.constant 0 : i32
    %c0_i32_0 = arith.constant 0 : i32
    %c0_i32_1 = arith.constant 0 : i32
    return %c0_i32, %c0_i32_0 : i32, i32
  }
  func.func @transform_2(%arg0: i32) -> (i32, i32) {
    %c0_i32 = arith.constant 0 : i32
    %c0_i32_0 = arith.constant 0 : i32
    %c0_i32_1 = arith.constant 0 : i32
    return %c0_i32, %c0_i32_0 : i32, i32
  }
  func.func @transform_3(%arg0: i32) -> (i32, i32) {
    %c0_i32 = arith.constant 0 : i32
    %c0_i32_0 = arith.constant 0 : i32
    %c0_i32_1 = arith.constant 0 : i32
    return %c0_i32, %c0_i32_0 : i32, i32
  }
  func.func @transform_4(%arg0: i32) -> (i32, i32) {
    %c0_i32 = arith.constant 0 : i32
    %c0_i32_0 = arith.constant 0 : i32
    %c0_i32_1 = arith.constant 0 : i32
    return %c0_i32, %c0_i32_0 : i32, i32
  }
  func.func @transform_5(%arg0: i32) -> (i32, i32) {
    %c0_i32 = arith.constant 0 : i32
    %c0_i32_0 = arith.constant 0 : i32
    %c0_i32_1 = arith.constant 0 : i32
    return %c0_i32, %c0_i32_0 : i32, i32
  }
  func.func @transform_6(%arg0: i32) -> (i32, i32) {
    %c0_i32 = arith.constant 0 : i32
    %c0_i32_0 = arith.constant 0 : i32
    %c0_i32_1 = arith.constant 0 : i32
    return %c0_i32, %c0_i32_0 : i32, i32
  }
  func.func @transform_7(%arg0: i32) -> (i32, i32) {
    %c0_i32 = arith.constant 0 : i32
    %c0_i32_0 = arith.constant 0 : i32
    return %arg0, %c0_i32 : i32, i32
  }
}

</mosaic_0001>

<bundles_post_ra>
// kernel: dqn_forward.1
= control target key start
LH: loop header
LB: loop body
LE: loop exit
PB: predicated region body
PF: predicated region fallthrough
CT: control target
= control target key end

     0   :  { %v433_v0 = vmov 0.0   ;;  %vm434_vm0 = vmmov 0   ;;  %vm45_vm1 = vcmask 130048   ;;  %vm320_vm2 = vcmask 64512   ;;  %s567_s1 = inlined_call_operand.vmem [shape: bf16[16,128], index: 1, kind: input, shape index: {}]   ;;  %s568_s0 = inlined_call_operand.vmem [shape: f32[16,16], index: 0, kind: input, shape index: {}]   ;;  %s569_s3 = inlined_call_operand.vmem [shape: bf16[128,128], index: 3, kind: input, shape index: {}]   ;;  %s570_s5 = inlined_call_operand.vmem [shape: bf16[128,8], index: 5, kind: input, shape index: {}]   ;;  %s571_s2 = inlined_call_operand.vmem [shape: f32[1,128], index: 2, kind: input, shape index: {}]   ;;  %s572_s4 = inlined_call_operand.vmem [shape: f32[1,128], index: 4, kind: input, shape index: {}]   ;;  %s573_s6 = inlined_call_operand.vmem [shape: f32[1,8], index: 6, kind: input, shape index: {}]   ;;  %s574_s7 = inlined_call_operand.vmem [shape: f32[16,8], index: 7, kind: output, shape index: {}]  }
   0x1   :  { %368 = vmatprep.subr.bf16.mxu0 %v433_v0  ;;  %v416_v1 = vld [vmem:[%s567_s1] sm:$0xff]   ;;  %370 = vmatprep.mubr.msk.bf16.mxu0 %vm434_vm0, %v433_v0  ;;  %v28_v3 = vld [vmem:[%s568_s0 + $0x8] sm:$0xff]  ;;  %v419_v7 = vld [vmem:[%s569_s3 + $0x10] sm:$0xff]  }
   0x2   :  { %v27_v2 = vld [vmem:[%s568_s0] sm:$0xff]  ;;  %374 = vmatprep.subr.bf16.mxu1 %v433_v0  ;;  %390 = vmatprep.mubr.msk.bf16.mxu1 %vm434_vm0, %v433_v0  ;;  %v418_v6 = vld [vmem:[%s569_s3 + $0x8] sm:$0xff]   ;;  %v420_v8 = vld [vmem:[%s569_s3 + $0x18] sm:$0xff]  }
   0x3   :  { %369 = vmatpush3.bf16.msra.mxu0 %v416_v1  ;;  %v29_v4 = vpack.c.bf16 %v28_v3, %v27_v2  ;;  %v417_v5 = vld [vmem:[%s569_s3] sm:$0xff]   ;;  %v422_v10 = vld [vmem:[%s569_s3 + $0x28] sm:$0xff]   ;;  %v423_v11 = vld [vmem:[%s569_s3 + $0x30] sm:$0xff]  }
   0x4   :  { %394 = vmatprep.subr.bf16.mxu0 %v433_v0  ;;  %375 = vmatpush3.bf16.msra.mxu1 %v417_v5  ;;  %v421_v9 = vld [vmem:[%s569_s3 + $0x20] sm:$0xff]   ;;  %v424_v12 = vld [vmem:[%s569_s3 + $0x38] sm:$0xff]   ;;  %v426_v14 = vld [vmem:[%s570_s5 + $0x8] sm:$0xff]  }
   0x5   :  { %376 = vmatprep.subr.bf16.mxu1 %v433_v0  ;;  %v425_v13 = vld [vmem:[%s570_s5] sm:$0xff]   ;;  %v427_v15 = vld [vmem:[%s570_s5 + $0x10] sm:$0xff]   ;;  %v428_v16 = vld [vmem:[%s570_s5 + $0x18] sm:$0xff]  }
   0x6   :  { %371 = vmatmul.mubr.msk.bf16.vlgmr.msra.gmra.mrb[0].mxu0 %vm45_vm1, %v29_v4  ;;  %v429_v17 = vld [vmem:[%s570_s5 + $0x20] sm:$0xff]   ;;  %v430_v18 = vld [vmem:[%s570_s5 + $0x28] sm:$0xff]   ;;  %v431_v29 = vld [vmem:[%s570_s5 + $0x30] sm:$0xff]  }
   0x7   :  { %410 = vmatprep.mubr.msk.bf16.mxu0 %vm434_vm0, %v433_v0  ;;  %395 = vmatpush3.bf16.msra.mxu0 %v425_v13  ;;  %v327_v19 = vld [vmem:[%s571_s2] ss:$0 sm:$0xff]  ;;  %v432_v30 = vld [vmem:[%s570_s5 + $0x38] sm:$0xff]  }
   0x8   :  { %377 = vmatpush3.bf16.msra.mxu1 %v418_v6  ;;  %396 = vmatprep.subr.bf16.mxu0 %v433_v0  ;;  %v330_v31 = vld [vmem:[%s572_s4] ss:$0 sm:$0xff] }
   0x9   :  { %378 = vmatprep.subr.bf16.mxu1 %v433_v0  ;;  %v339_v41 = vld [vmem:[%s573_s6] ss:$0 sm:$0xff] }
   0xb   :  { %397 = vmatpush3.bf16.msra.mxu0 %v426_v14 }
   0xc   :  { %379 = vmatpush3.bf16.msra.mxu1 %v419_v7  ;;  %398 = vmatprep.subr.bf16.mxu0 %v433_v0 }
   0xd   :  { %380 = vmatprep.subr.bf16.mxu1 %v433_v0 }
   0xf   :  { %399 = vmatpush3.bf16.msra.mxu0 %v427_v15 }
  0x10   :  { %381 = vmatpush3.bf16.msra.mxu1 %v420_v8  ;;  %400 = vmatprep.subr.bf16.mxu0 %v433_v0 }
  0x11   :  { %382 = vmatprep.subr.bf16.mxu1 %v433_v0 }
  0x13   :  { %401 = vmatpush3.bf16.msra.mxu0 %v428_v16 }
  0x14   :  { %383 = vmatpush3.bf16.msra.mxu1 %v421_v9  ;;  %402 = vmatprep.subr.bf16.mxu0 %v433_v0 }
  0x15   :  { %384 = vmatprep.subr.bf16.mxu1 %v433_v0 }
  0x17   :  { %403 = vmatpush3.bf16.msra.mxu0 %v429_v17 }
  0x18   :  { %385 = vmatpush3.bf16.msra.mxu1 %v422_v10  ;;  %404 = vmatprep.subr.bf16.mxu0 %v433_v0 }
  0x19   :  { %386 = vmatprep.subr.bf16.mxu1 %v433_v0 }
  0x1b   :  { %405 = vmatpush3.bf16.msra.mxu0 %v430_v18 }
  0x1c   :  { %387 = vmatpush3.bf16.msra.mxu1 %v423_v11  ;;  %406 = vmatprep.subr.bf16.mxu0 %v433_v0 }
  0x1d   :  { %388 = vmatprep.subr.bf16.mxu1 %v433_v0 }
  0x1f   :  { %407 = vmatpush3.bf16.msra.mxu0 %v431_v29 }
  0x20   :  { %389 = vmatpush3.bf16.msra.mxu1 %v424_v12  ;;  %408 = vmatprep.subr.bf16.mxu0 %v433_v0 }
  0x23   :  { %409 = vmatpush3.bf16.msra.mxu0 %v432_v30 }
  0xd9   :  { %v83_v20 = vpop.f32.mrb[0].mxu0 }
  0xda   :  { %v84_v21 = vadd.f32 %v327_v19, %v83_v20  ;;  %v372_v22 = vpop.f32.mrb[1].mxu0 }
  0xdb   :  { %v86_v23 = vpop.f32.mrb[2].mxu0 }
  0xdc   :  { %v87_v24 = vadd.f32 %v327_v19, %v86_v23  ;;  %v373_v25 = vpop.f32.mrb[3].mxu0  ;;  %v90_v26 = vmax.f32 %v84_v21, 0.0 }
  0xde   :  { %v91_v27 = vmax.f32 %v87_v24, 0.0 }
  0xe0   :  { %v92_v28 = vpack.c.bf16 %v91_v27, %v90_v26 }
  0xe2   :  { %391 = vmatmul.mubr.bf16.vlgmr.msra.gmra.mrb[0].mxu1 %v92_v28 }
 0x1b5   :  { %v198_v32 = vpop.f32.mrb[0].mxu1 }
 0x1b6   :  { %v199_v33 = vadd.f32 %v330_v31, %v198_v32  ;;  %v392_v34 = vpop.f32.mrb[1].mxu1 }
 0x1b7   :  { %v201_v35 = vpop.f32.mrb[2].mxu1 }
 0x1b8   :  { %v202_v36 = vadd.f32 %v330_v31, %v201_v35  ;;  %v393_v37 = vpop.f32.mrb[3].mxu1  ;;  %v205_v38 = vmax.f32 %v199_v33, 0.0 }
 0x1ba   :  { %v206_v39 = vmax.f32 %v202_v36, 0.0 }
 0x1bc   :  { %v207_v40 = vpack.c.bf16 %v206_v39, %v205_v38 }
 0x1be   :  { %411 = vmatmul.mubr.bf16.vlgmr.msra.gmra.mrb[4].mxu0 %v207_v40 }
 0x291   :  { %v313_v42 = vpop.f32.mrb[4].mxu0 }
 0x292   :  { %v314_v43 = vadd.f32 %v339_v41, %v313_v42  ;;  %v412_v44 = vpop.f32.mrb[5].mxu0 }
 0x293   :  { %v316_v45 = vpop.f32.mrb[6].mxu0 }
 0x294   :  { %321 = vst.msk [vmem:[%s574_s7] sm:$0xff] %vm320_vm2, %v314_v43  ;;  %v317_v46 = vadd.f32 %v339_v41, %v316_v45  ;;  %v413_v47 = vpop.f32.mrb[7].mxu0 }
 0x296   :  { %322 = vst.msk [vmem:[%s574_s7 + $0x8] sm:$0xff] %vm320_vm2, %v317_v46 }

</bundles_post_ra>
